<compile_context>
chip_gen: v7x
topology: tpu7x:2x2x1
jax: 0.10.0
libtpu: 0.0.40
codegen_flags: <defaults>
</compile_context>

<pallas_src>
from functools import partial

import numpy as np
import jax
import jax.numpy as jnp
from jax.experimental import pallas as pl
from jax.experimental.pallas import tpu as pltpu


_VMEM_LIMIT = 48 * 1024 * 1024   # safe on v5e/v6e (128 MiB) and v7x (64 MiB)
_TM_CAP = 512                    # output-row tile cap
_TN_CAP = 1024                   # output-col tile cap
_TK_CAP = 1024                   # contraction tile cap


# ----------------------------------------------------------------------------
# Pallas kernels
# ----------------------------------------------------------------------------

def _mm_affine_kernel(a_ref, w_ref, sb_ref, *rest, relu, has_res):
    """out = relu?((A @ W) * scale + shift [+ residual]), K-axis accumulation."""
    if has_res:
        res_ref, o_ref, acc_ref = rest
    else:
        res_ref = None
        o_ref, acc_ref = rest

    k = pl.program_id(2)

    @pl.when(k == 0)
    def _():
        acc_ref[...] = jnp.zeros_like(acc_ref)

    acc_ref[...] += jnp.dot(a_ref[...], w_ref[...],
                            preferred_element_type=jnp.float32)

    @pl.when(k == pl.num_programs(2) - 1)
    def _():
        y = acc_ref[...] * sb_ref[0:1, :] + sb_ref[1:2, :]
        if has_res:
            y = y + res_ref[...].astype(jnp.float32)
        if relu:
            y = jnp.maximum(y, 0.0)
        o_ref[...] = y.astype(o_ref.dtype)


def _aspp_project_kernel(a0_ref, a1_ref, a2_ref, a3_ref, w_ref, sb_ref,
                         res_ref, o_ref):
    """ASPP projection: sum_b (branch_b @ W_b), + BN affine + pooled-branch
    constant (residual) + ReLU, all fused.  Avoids the 1280-channel concat."""
    acc = jnp.dot(a0_ref[...], w_ref[0], preferred_element_type=jnp.float32)
    acc += jnp.dot(a1_ref[...], w_ref[1], preferred_element_type=jnp.float32)
    acc += jnp.dot(a2_ref[...], w_ref[2], preferred_element_type=jnp.float32)
    acc += jnp.dot(a3_ref[...], w_ref[3], preferred_element_type=jnp.float32)
    y = acc * sb_ref[0:1, :] + sb_ref[1:2, :] + res_ref[...].astype(jnp.float32)
    o_ref[...] = jnp.maximum(y, 0.0).astype(o_ref.dtype)


def _maxpool_kernel(*refs):
    # refs[:9]: row-tiles of the nine 3x3 window taps; refs[9]: output tile.
    o_ref = refs[-1]
    m = refs[0][...]
    for r in refs[1:-1]:
        m = jnp.maximum(m, r[...])
    o_ref[...] = m


def _gap_kernel(x_ref, o_ref, acc_ref, *, inv_hw):
    # x_ref: (1, thw, C) tile of the flattened spatial axis; sum-reduce over it.
    t = pl.program_id(1)

    @pl.when(t == 0)
    def _():
        acc_ref[...] = jnp.zeros_like(acc_ref)

    acc_ref[...] += jnp.sum(x_ref[...].astype(jnp.float32), axis=1,
                            keepdims=True)

    @pl.when(t == pl.num_programs(1) - 1)
    def _():
        o_ref[...] = (acc_ref[...] * inv_hw).astype(o_ref.dtype)


# ----------------------------------------------------------------------------
# Tiling helpers
# ----------------------------------------------------------------------------

def _round_up(x, m):
    return (x + m - 1) // m * m


def _largest_dividing_tile(p, cap):
    """Largest multiple of 128 <= cap that divides p (p is a multiple of 128)."""
    t = min(cap, p)
    t -= t % 128
    while p % t:
        t -= 128
    return t


def _pick_m_tile(M):
    # Small M: pad to a 16-row multiple (cheap) and use a single block.
    # Large M: fixed 512-row tile; the tail block is handled by masked stores.
    if M < _TM_CAP:
        pm = _round_up(M, 16)
        return pm, pm
    return _TM_CAP, M


def _pick_k_tile(K):
    # K <= cap: single chunk of the exact size (full-dim block is legal, no pad).
    if K <= _TK_CAP:
        return K, K
    pk = _round_up(K, 128)
    return _largest_dividing_tile(pk, _TK_CAP), pk


def _pick_n_tile(N):
    if N <= _TN_CAP:
        return N, N
    pn = _round_up(N, 128)
    return _largest_dividing_tile(pn, _TN_CAP), pn


# ----------------------------------------------------------------------------
# Pallas wrappers
# ----------------------------------------------------------------------------

@partial(jax.jit, static_argnames=("relu", "out_dtype"))
def matmul_affine(a, w, scale, shift, residual=None, *, relu,
                  out_dtype=jnp.bfloat16):
    """(M,K) @ (K,N) * scale[N] + shift[N] (+residual) (opt. ReLU) on the MXU.

    bf16 operands, f32 accumulation.  Exact-K tiling (no K padding in this
    network); M tail handled by partial blocks, so no A/residual/output copies
    for large M.
    """
    M, K = a.shape
    _, N = w.shape
    tm, pm = _pick_m_tile(M)
    tk, pk = _pick_k_tile(K)
    tn, pn = _pick_n_tile(N)

    a = a.astype(jnp.bfloat16)
    w = w.astype(jnp.bfloat16)
    if pm != M or pk != K:
        a = jnp.pad(a, ((0, pm - M), (0, pk - K)))
    if pk != K or pn != N:
        w = jnp.pad(w, ((0, pk - K), (0, pn - N)))
    # scale/shift packed into one (2, pn) f32 array -> single DMA per j-block.
    sb = jnp.stack([scale.astype(jnp.float32), shift.astype(jnp.float32)], 0)
    if pn != N:
        sb = jnp.pad(sb, ((0, 0), (0, pn - N)))

    has_res = residual is not None
    in_specs = [
        pl.BlockSpec((tm, tk), lambda i, j, k: (i, k)),
        pl.BlockSpec((tk, tn), lambda i, j, k: (k, j)),
        pl.BlockSpec((2, tn), lambda i, j, k: (0, j)),
    ]
    operands = [a, w, sb]
    if has_res:
        r = residual
        if pm != M or pn != N:
            r = jnp.pad(r, ((0, pm - M), (0, pn - N)))
        in_specs.append(pl.BlockSpec((tm, tn), lambda i, j, k: (i, j)))
        operands.append(r)

    grid = (pl.cdiv(pm, tm), pn // tn, pk // tk)
    out = pl.pallas_call(
        partial(_mm_affine_kernel, relu=relu, has_res=has_res),
        out_shape=jax.ShapeDtypeStruct((pm, pn), out_dtype),
        grid_spec=pltpu.PrefetchScalarGridSpec(
            num_scalar_prefetch=0,
            grid=grid,
            in_specs=in_specs,
            out_specs=pl.BlockSpec((tm, tn), lambda i, j, k: (i, j)),
            scratch_shapes=[pltpu.VMEM((tm, tn), jnp.float32)],
        ),
        compiler_params=pltpu.CompilerParams(
            dimension_semantics=("parallel", "parallel", "arbitrary"),
            vmem_limit_bytes=_VMEM_LIMIT),
    )(*operands)
    if pm != M or pn != N:
        out = out[:M, :N]
    return out


@jax.jit
def aspp_project_matmul(b0, b1, b2, b3, w_stack, sb, resid):
    """Fused ASPP projection: sum of four (M,256)@(256,256) + affine + pooled
    constant + ReLU in one pass (no 1280-channel concat)."""
    M, C = b0.shape
    cout = w_stack.shape[-1]
    tm, pm = _pick_m_tile(M)

    def padrows(x):
        return x if pm == M else jnp.pad(x, ((0, pm - M), (0, 0)))

    b0, b1, b2, b3, resid = (padrows(b0), padrows(b1), padrows(b2),
                             padrows(b3), padrows(resid))
    grid = (pl.cdiv(pm, tm),)
    out = pl.pallas_call(
        _aspp_project_kernel,
        out_shape=jax.ShapeDtypeStruct((pm, cout), jnp.bfloat16),
        grid_spec=pltpu.PrefetchScalarGridSpec(
            num_scalar_prefetch=0,
            grid=grid,
            in_specs=[pl.BlockSpec((tm, C), lambda i: (i, 0))] * 4
                     + [pl.BlockSpec((4, C, cout), lambda i: (0, 0, 0)),
                        pl.BlockSpec((2, cout), lambda i: (0, 0)),
                        pl.BlockSpec((tm, cout), lambda i: (i, 0))],
            out_specs=pl.BlockSpec((tm, cout), lambda i: (i, 0)),
        ),
        compiler_params=pltpu.CompilerParams(
            dimension_semantics=("parallel",),
            vmem_limit_bytes=_VMEM_LIMIT),
    )(b0, b1, b2, b3, w_stack, sb, resid)
    return out if pm == M else out[:M]


@jax.jit
def maxpool_3x3_s2_p1(x):
    """3x3 / stride-2 / pad-1 max pool.  Lane-dense tiles: for C=64 two
    consecutive output positions are folded into the 128-lane dim."""
    N, H, W, C = x.shape
    Ho = (H + 2 - 3) // 2 + 1
    Wo = (W + 2 - 3) // 2 + 1
    neg = jnp.asarray(-jnp.inf, x.dtype)
    xp = jnp.pad(x, ((0, 0), (1, 1), (1, 1), (0, 0)), constant_values=neg)

    M = N * Ho * Wo
    F = 128 // C if (C < 128 and 128 % C == 0) else 1
    tmr = min(_round_up(M, 16 * F), 1024)
    pm = _round_up(M, tmr)

    views = []
    for kh in range(3):
        for kw in range(3):
            v = xp[:, kh: kh + (Ho - 1) * 2 + 1: 2,
                      kw: kw + (Wo - 1) * 2 + 1: 2, :].reshape(M, C)
            v = jnp.pad(v, ((0, pm - M), (0, 0)))
            views.append(v.reshape(pm // F, F * C))

    out = pl.pallas_call(
        _maxpool_kernel,
        out_shape=jax.ShapeDtypeStruct((pm // F, F * C), x.dtype),
        grid=(pm // tmr,),
        in_specs=[pl.BlockSpec((tmr // F, F * C), lambda i: (i, 0))] * 9,
        out_specs=pl.BlockSpec((tmr // F, F * C), lambda i: (i, 0)),
        compiler_params=pltpu.CompilerParams(
            dimension_semantics=("parallel",),
            vmem_limit_bytes=_VMEM_LIMIT),
    )(*views)
    return out.reshape(pm, C)[:M].reshape(N, Ho, Wo, C)


@jax.jit
def global_avg_pool(x):
    """Global average pool with a tiled (reduction-axis) grid + f32 accumulator."""
    N, H, W, C = x.shape
    HW = H * W
    thw = min(_round_up(HW, 16), 512)
    pHW = _round_up(HW, thw)
    xr = jnp.pad(x.reshape(N, HW, C), ((0, 0), (0, pHW - HW), (0, 0)))

    out = pl.pallas_call(
        partial(_gap_kernel, inv_hw=1.0 / HW),
        out_shape=jax.ShapeDtypeStruct((N, 1, C), x.dtype),
        grid=(N, pHW // thw),
        in_specs=[pl.BlockSpec((1, thw, C), lambda n, t: (n, t, 0))],
        out_specs=pl.BlockSpec((1, 1, C), lambda n, t: (n, 0, 0)),
        scratch_shapes=[pltpu.VMEM((1, 1, C), jnp.float32)],
        compiler_params=pltpu.CompilerParams(
            dimension_semantics=("parallel", "arbitrary"),
            vmem_limit_bytes=_VMEM_LIMIT),
    )(xr)
    return out.reshape(N, 1, 1, C)


# ----------------------------------------------------------------------------
# Conv (im2col glue) + BN(+residual)(+ReLU) folded into the matmul epilogue
# ----------------------------------------------------------------------------

def im2col(x, k, stride, dilation, padding):
    N, H, W, C = x.shape
    xp = jnp.pad(x, ((0, 0), (padding, padding), (padding, padding), (0, 0)))
    Hp, Wp = H + 2 * padding, W + 2 * padding
    Ho = (Hp - dilation * (k - 1) - 1) // stride + 1
    Wo = (Wp - dilation * (k - 1) - 1) // stride + 1
    pieces = []
    for kh in range(k):
        for kw in range(k):
            hs, ws = kh * dilation, kw * dilation
            patch = xp[:, hs: hs + (Ho - 1) * stride + 1: stride,
                          ws: ws + (Wo - 1) * stride + 1: stride, :]
            pieces.append(patch)
    cols = jnp.concatenate(pieces, axis=-1)          # (N, Ho, Wo, k*k*C)
    return cols.reshape(N * Ho * Wo, k * k * C), Ho, Wo


def conv_bn_act(x, p, *, stride=1, dilation=1, padding=0, relu=True,
                residual=None, out_dtype=jnp.bfloat16):
    N = x.shape[0]
    w4 = p["w"]                                      # (k, k, cin, cout)
    k = w4.shape[0]
    cout = w4.shape[-1]
    w2 = w4.reshape(-1, cout)
    if k == 1 and stride == 1 and padding == 0:
        Ho, Wo = x.shape[1], x.shape[2]
        cols = x.reshape(N * Ho * Wo, x.shape[3])
    else:
        cols, Ho, Wo = im2col(x, k, stride, dilation, padding)
    res2 = None if residual is None else residual.reshape(-1, cout)
    y = matmul_affine(cols, w2, p["scale"], p["shift"], res2,
                      relu=relu, out_dtype=out_dtype)
    return y.reshape(N, Ho, Wo, cout)


def aspp_dilated_branch(x, p, rate):
    """3x3 dilated conv (stride 1, pad=rate) + BN + ReLU without im2col.

    Because cin (2048) >> cout (256), the conv is computed as one matmul to
    9*cout channels (K = cin only) followed by a shift-add (col2im) over the
    nine taps; BN affine + ReLU fuse into that elementwise epilogue."""
    N, H, W, C = x.shape
    w4 = p["w"]                                     # (3, 3, C, cout)
    cout = w4.shape[-1]
    w_all = jnp.transpose(w4.astype(jnp.bfloat16), (2, 0, 1, 3)).reshape(
        C, 9 * cout)
    ones = jnp.ones((9 * cout,), jnp.float32)
    zeros = jnp.zeros((9 * cout,), jnp.float32)
    z = matmul_affine(x.reshape(N * H * W, C), w_all, ones, zeros, relu=False)
    z = z.reshape(N, H, W, 9, cout)

    taps = []
    for kh in range(3):
        for kw in range(3):
            dy, dx = (kh - 1) * rate, (kw - 1) * rate
            y0, y1 = max(0, -dy), min(H, H - dy)
            x0, x1 = max(0, -dx), min(W, W - dx)
            if y1 <= y0 or x1 <= x0:
                continue                             # tap entirely out of range
            src = z[:, y0 + dy:y1 + dy, x0 + dx:x1 + dx, kh * 3 + kw, :]
            taps.append(jnp.pad(src.astype(jnp.float32),
                                ((0, 0), (y0, H - y1), (x0, W - x1), (0, 0))))
    acc = taps[0]
    for t in taps[1:]:
        acc = acc + t
    y = acc * p["scale"] + p["shift"]
    return jnp.maximum(y, 0.0).astype(jnp.bfloat16)


# ----------------------------------------------------------------------------
# Deterministic parameter construction (shapes as in torchvision DeepLabV3-R50)
# ----------------------------------------------------------------------------

_PARAM_KEY = [jax.random.PRNGKey(1)]


def _next_key():
    _PARAM_KEY[0], sub = jax.random.split(_PARAM_KEY[0])
    return sub


def make_conv_bn(cin, cout, k, with_bn=True, bias=False):
    std = np.sqrt(2.0 / (k * k * cin))
    w = jax.random.normal(_next_key(), (k, k, cin, cout), jnp.float32) * std
    p = {"w": w}
    if with_bn:
        gamma = 1.0 + 0.1 * jax.random.normal(_next_key(), (cout,), jnp.float32)
        beta = 0.1 * jax.random.normal(_next_key(), (cout,), jnp.float32)
        mean = 0.1 * jax.random.normal(_next_key(), (cout,), jnp.float32)
        var = 1.0 + 0.1 * jnp.abs(jax.random.normal(_next_key(), (cout,), jnp.float32))
        scale = gamma / jnp.sqrt(var + 1e-5)
        shift = beta - mean * scale
    elif bias:
        scale = jnp.ones((cout,), jnp.float32)
        shift = 0.1 * jax.random.normal(_next_key(), (cout,), jnp.float32)
    else:
        scale = jnp.ones((cout,), jnp.float32)
        shift = jnp.zeros((cout,), jnp.float32)
    p["scale"] = scale
    p["shift"] = shift
    return p


def make_bottleneck_params(inplanes, planes, downsample):
    blk = {"conv1": make_conv_bn(inplanes, planes, 1),
           "conv2": make_conv_bn(planes, planes, 3),
           "conv3": make_conv_bn(planes, planes * 4, 1)}
    if downsample:
        blk["downsample"] = make_conv_bn(inplanes, planes * 4, 1)
    return blk


def build_params(num_classes=21):
    """Returns (params pytree of arrays only, static layer config)."""
    backbone = {"stem": make_conv_bn(3, 64, 7)}
    cfg = {}
    inplanes, dilation = 64, 1
    # (planes, blocks, stride, replace_stride_with_dilation) -- deeplabv3_resnet50
    layer_cfg = [(64, 3, 1, False), (128, 4, 2, False),
                 (256, 6, 2, True), (512, 3, 2, True)]
    for li, (planes, blocks, stride, dilate) in enumerate(layer_cfg, start=1):
        prev_dilation = dilation
        s = stride
        if dilate:
            dilation *= stride
            s = 1
        downsample = (s != 1) or (inplanes != planes * 4)
        blks = [make_bottleneck_params(inplanes, planes, downsample)]
        meta = [(s, prev_dilation)]
        inplanes = planes * 4
        for _ in range(1, blocks):
            blks.append(make_bottleneck_params(inplanes, planes, False))
            meta.append((1, dilation))
        backbone[f"layer{li}"] = blks
        cfg[f"layer{li}"] = tuple(meta)

    aspp = {"b0": make_conv_bn(2048, 256, 1),
            "b1": make_conv_bn(2048, 256, 3),
            "b2": make_conv_bn(2048, 256, 3),
            "b3": make_conv_bn(2048, 256, 3),
            "b4": make_conv_bn(2048, 256, 1),
            "project": make_conv_bn(5 * 256, 256, 1)}
    head_conv = make_conv_bn(256, 256, 3)
    head_cls = make_conv_bn(256, num_classes, 1, with_bn=False, bias=True)
    params = {"backbone": backbone, "aspp": aspp,
              "head_conv": head_conv, "head_cls": head_cls}
    return params, cfg


# ----------------------------------------------------------------------------
# Model forward
# ----------------------------------------------------------------------------

def bottleneck_forward(x, blk, stride, dilation):
    if "downsample" in blk:
        identity = conv_bn_act(x, blk["downsample"], stride=stride, relu=False)
    else:
        identity = x
    out = conv_bn_act(x, blk["conv1"], relu=True)
    out = conv_bn_act(out, blk["conv2"], stride=stride, dilation=dilation,
                      padding=dilation, relu=True)
    # conv3 + BN + residual add + ReLU fused in one Pallas matmul epilogue.
    out = conv_bn_act(out, blk["conv3"], relu=True, residual=identity)
    return out


def resnet_backbone(x, params, cfg):
    x = conv_bn_act(x, params["stem"], stride=2, padding=3, relu=True)
    x = maxpool_3x3_s2_p1(x)
    for name in ("layer1", "layer2", "layer3", "layer4"):
        for blk, (stride, dilation) in zip(params[name], cfg[name]):
            x = bottleneck_forward(x, blk, stride, dilation)
    return x


def aspp_forward(x, p):
    N, H, W, _ = x.shape
    b0 = conv_bn_act(x, p["b0"], relu=True)                    # 1x1 branch
    branches = [b0]
    for i, rate in enumerate((12, 24, 36)):
        branches.append(aspp_dilated_branch(x, p[f"b{i+1}"], rate))
    # ASPP pooling branch: global avg pool -> 1x1 conv/BN/ReLU.
    gp = global_avg_pool(x)                                    # (N,1,1,2048)
    gp = conv_bn_act(gp, p["b4"], relu=True)                   # (N,1,1,256)

    # Project conv accumulated over the 4 spatial branches; the pooled branch
    # is spatially constant, so its contribution (scaled by the BN scale) is
    # folded in through the residual path instead of concat + broadcast.
    w2 = p["project"]["w"].reshape(5 * 256, 256)
    w_stack = w2[:1024].reshape(4, 256, 256).astype(jnp.bfloat16)
    w_pool = w2[1024:]
    scale, shift = p["project"]["scale"], p["project"]["shift"]
    ones = jnp.ones((256,), jnp.float32)
    zeros = jnp.zeros((256,), jnp.float32)
    const = matmul_affine(gp.reshape(N, 256), w_pool, ones, zeros,
                          relu=False, out_dtype=jnp.float32)   # (N,256)
    resid = const * scale[None, :]
    resid_full = jnp.broadcast_to(
        resid[:, None, None, :], (N, H, W, 256)).reshape(N * H * W, 256)

    sb = jnp.stack([scale, shift], 0).astype(jnp.float32)
    flat = [b.reshape(N * H * W, 256).astype(jnp.bfloat16) for b in branches]
    out = aspp_project_matmul(flat[0], flat[1], flat[2], flat[3],
                              w_stack, sb, resid_full)
    # Dropout(0.5) -> identity in eval mode.
    return out.reshape(N, H, W, 256)


def _resize_matrix(out_size, in_size):
    """Bilinear (align_corners=False) interpolation matrix, PyTorch semantics."""
    R = np.zeros((out_size, in_size), np.float32)
    for i in range(out_size):
        src = max((i + 0.5) * in_size / out_size - 0.5, 0.0)
        i0 = min(int(np.floor(src)), in_size - 1)
        i1 = min(i0 + 1, in_size - 1)
        w1 = src - i0
        R[i, i0] += 1.0 - w1
        R[i, i1] += w1
    return jnp.asarray(R)


def bilinear_resize_to_nchw(y, out_h, out_w):
    """(N,h,w,C) -> (N,C,out_h,out_w).  bf16 MXU operands, f32 accumulation.
    Height pass first so only a low-width intermediate is ever transposed."""
    N, h, w, C = y.shape
    Rh = _resize_matrix(out_h, h)
    Rw = _resize_matrix(out_w, w)
    ones_h = jnp.ones((out_h,), jnp.float32)
    zeros_h = jnp.zeros((out_h,), jnp.float32)
    ones_w = jnp.ones((out_w,), jnp.float32)
    zeros_w = jnp.zeros((out_w,), jnp.float32)

    yl = jnp.transpose(y, (0, 3, 2, 1))                   # (N,C,w,h) small
    z = matmul_affine(yl.reshape(N * C * w, h), Rh.T, ones_h, zeros_h,
                      relu=False, out_dtype=jnp.bfloat16)
    z = z.reshape(N, C, w, out_h).transpose(0, 1, 3, 2)   # (N,C,out_h,w) medium
    z = matmul_affine(z.reshape(N * C * out_h, w), Rw.T, ones_w, zeros_w,
                      relu=False, out_dtype=jnp.float32)
    return z.reshape(N, C, out_h, out_w)


def deeplabv3_forward(x_nchw, params, cfg):
    N, _, H, W = x_nchw.shape
    x = jnp.transpose(x_nchw, (0, 2, 3, 1)).astype(jnp.bfloat16)  # NCHW->NHWC
    feat = resnet_backbone(x, params["backbone"], cfg)     # (N, H/8, W/8, 2048)
    y = aspp_forward(feat, params["aspp"])                 # (N, h, w, 256)
    y = conv_bn_act(y, params["head_conv"], padding=1, relu=True)
    y = conv_bn_act(y, params["head_cls"], relu=False)     # (N, h, w, 21) bf16
    return bilinear_resize_to_nchw(y, H, W)                # (N, 21, H, W) f32


# ----------------------------------------------------------------------------

if __name__ == "__main__":
    x = jax.random.normal(jax.random.PRNGKey(0), (2, 3, 16, 16), jnp.float32)
    params, cfg = build_params(21)
    fwd = jax.jit(lambda xx, pp: deeplabv3_forward(xx, pp, cfg))
    out = jax.block_until_ready(fwd(x, params))
    assert out.shape == (2, 21, 16, 16), out.shape
    assert out.dtype == jnp.float32
    print("KERNEL_OK")
</pallas_src>

<mosaic_0001>
module attributes {stable_mosaic.version = 11 : i64} {
  func.func @_mm_affine_kernel(%arg0: i32, %arg1: i32, %arg2: i32, %arg3: memref<128x147xbf16, #tpu.memory_space<vmem>>, %arg4: memref<147x64xbf16, #tpu.memory_space<vmem>>, %arg5: memref<2x64xf32, #tpu.memory_space<vmem>>, %arg6: memref<128x64xbf16, #tpu.memory_space<vmem>>, %arg7: memref<128x64xf32, #tpu.memory_space<vmem>>) attributes {dimension_semantics = [#tpu.dimension_semantics<parallel>, #tpu.dimension_semantics<parallel>, #tpu.dimension_semantics<arbitrary>], iteration_bounds = array<i64: 1, 1, 1>, scalar_prefetch = 0 : i64, scratch_operands = 1 : i64, tpu.core_type = #tpu.core_type<tc>, window_params = [{transform_indices = @transform_0, window_bounds = array<i64: 128, 147>}, {transform_indices = @transform_1, window_bounds = array<i64: 147, 64>}, {transform_indices = @transform_2, window_bounds = array<i64: 2, 64>}, {transform_indices = @transform_3, window_bounds = array<i64: 128, 64>}]} {
    %c0_i32 = arith.constant 0 : i32
    %0 = arith.cmpi eq, %arg2, %c0_i32 : i32
    %1 = arith.extui %0 : i1 to i32
    %c0_i32_0 = arith.constant 0 : i32
    %2 = arith.cmpi ne, %1, %c0_i32_0 : i32
    scf.if %2 {
      %cst_10 = arith.constant 0.000000e+00 : f32
      %12 = vector.broadcast %cst_10 : f32 to vector<128x64xf32>
      %c0_11 = arith.constant 0 : index
      %c0_12 = arith.constant 0 : index
      %13 = vector.load %arg7[%c0_11, %c0_12] : memref<128x64xf32, #tpu.memory_space<vmem>>, vector<128x64xf32>
      tpu.vector_store %arg7[%c0_11, %c0_12], %12 {strides = array<i32>} : memref<128x64xf32, #tpu.memory_space<vmem>>, vector<128x64xf32>,
    } else {
    }
    %c0 = arith.constant 0 : index
    %c0_1 = arith.constant 0 : index
    %3 = vector.load %arg7[%c0, %c0_1] : memref<128x64xf32, #tpu.memory_space<vmem>>, vector<128x64xf32>
    %c0_2 = arith.constant 0 : index
    %c0_3 = arith.constant 0 : index
    %4 = vector.load %arg3[%c0_2, %c0_3] : memref<128x147xbf16, #tpu.memory_space<vmem>>, vector<128x147xbf16>
    %c0_4 = arith.constant 0 : index
    %c0_5 = arith.constant 0 : index
    %5 = vector.load %arg4[%c0_4, %c0_5] : memref<147x64xbf16, #tpu.memory_space<vmem>>, vector<147x64xbf16>
    %cst = arith.constant dense<0.000000e+00> : vector<128x64xf32>
    %6 = tpu.matmul %4, %5, %cst {dimension_numbers = #tpu.dot_dimension_numbers<[1], [0], [0], [1], [0, 0, 1, 1], [], []>} : vector<128x147xbf16>, vector<147x64xbf16>, vector<128x64xf32> -> vector<128x64xf32>
    %7 = arith.addf %3, %6 : vector<128x64xf32>
    %c0_6 = arith.constant 0 : index
    %c0_7 = arith.constant 0 : index
    %8 = vector.load %arg7[%c0_6, %c0_7] : memref<128x64xf32, #tpu.memory_space<vmem>>, vector<128x64xf32>
    tpu.vector_store %arg7[%c0_6, %c0_7], %7 {strides = array<i32>} : memref<128x64xf32, #tpu.memory_space<vmem>>, vector<128x64xf32>,
    %c0_i32_8 = arith.constant 0 : i32
    %9 = arith.cmpi eq, %arg2, %c0_i32_8 : i32
    %10 = arith.extui %9 : i1 to i32
    %c0_i32_9 = arith.constant 0 : i32
    %11 = arith.cmpi ne, %10, %c0_i32_9 : i32
    scf.if %11 {
      %c0_10 = arith.constant 0 : index
      %c0_11 = arith.constant 0 : index
      %12 = vector.load %arg7[%c0_10, %c0_11] : memref<128x64xf32, #tpu.memory_space<vmem>>, vector<128x64xf32>
      %c0_12 = arith.constant 0 : index
      %c0_13 = arith.constant 0 : index
      %13 = vector.load %arg5[%c0_12, %c0_13] : memref<2x64xf32, #tpu.memory_space<vmem>>, vector<1x64xf32>
      %14 = vector.broadcast %13 : vector<1x64xf32> to vector<128x64xf32>
      %15 = arith.mulf %12, %14 : vector<128x64xf32>
      %c1 = arith.constant 1 : index
      %c0_14 = arith.constant 0 : index
      %16 = vector.load %arg5[%c1, %c0_14] : memref<2x64xf32, #tpu.memory_space<vmem>>, vector<1x64xf32>
      %17 = vector.broadcast %16 : vector<1x64xf32> to vector<128x64xf32>
      %18 = arith.addf %15, %17 : vector<128x64xf32>
      %cst_15 = arith.constant 0.000000e+00 : f32
      %19 = vector.broadcast %cst_15 : f32 to vector<128x64xf32>
      %20 = arith.maximumf %18, %19 : vector<128x64xf32>
      %21 = arith.truncf %20 : vector<128x64xf32> to vector<128x64xbf16>
      %c0_16 = arith.constant 0 : index
      %c0_17 = arith.constant 0 : index
      %22 = vector.load %arg6[%c0_16, %c0_17] : memref<128x64xbf16, #tpu.memory_space<vmem>>, vector<128x64xbf16>
      tpu.vector_store %arg6[%c0_16, %c0_17], %21 {strides = array<i32>} : memref<128x64xbf16, #tpu.memory_space<vmem>>, vector<128x64xbf16>,
    } else {
    }
    return
  }
  func.func @transform_0(%arg0: i32, %arg1: i32, %arg2: i32) -> (i32, i32) {
    %c0_i32 = arith.constant 0 : i32
    return %arg0, %arg2 : i32, i32
  }
  func.func @transform_1(%arg0: i32, %arg1: i32, %arg2: i32) -> (i32, i32) {
    %c0_i32 = arith.constant 0 : i32
    return %arg2, %arg1 : i32, i32
  }
  func.func @transform_2(%arg0: i32, %arg1: i32, %arg2: i32) -> (i32, i32) {
    %c0_i32 = arith.constant 0 : i32
    %c0_i32_0 = arith.constant 0 : i32
    return %c0_i32, %arg1 : i32, i32
  }
  func.func @transform_3(%arg0: i32, %arg1: i32, %arg2: i32) -> (i32, i32) {
    %c0_i32 = arith.constant 0 : i32
    return %arg0, %arg1 : i32, i32
  }
}

</mosaic_0001>

<bundles_post_ra>
// kernel: matmul_affine.1
= control target key start
LH: loop header
LB: loop body
LE: loop exit
PB: predicated region body
PF: predicated region fallthrough
CT: control target
= control target key end

     0   :  { %v665_v0 = vmov 0   ;;  %vm19_vm0 = vcmask 523264   ;;  %v666_v3 = vmov 0.0   ;;  %vm216_vm1 = vcmask 154624   ;;  %s932_s1 = inlined_call_operand.vmem [shape: bf16[147,64], index: 1, kind: input, shape index: {}]   ;;  %s933_s0 = inlined_call_operand.vmem [shape: bf16[128,147], index: 0, kind: input, shape index: {}]   ;;  %s934_s2 = inlined_call_operand.vmem [shape: f32[2,64], index: 2, kind: input, shape index: {}]   ;;  %s935_s3 = inlined_call_operand.vmem [shape: bf16[128,64], index: 3, kind: output, shape index: {}]  }
   0x1   :  { %248 = vmatprep.subr.bf16.mxu0 %v665_v0  ;;  %608 = vmatprep.subr.bf16.mxu1 %v665_v0  ;;  %v631_v1 = vld [vmem:[%s932_s1] sm:$0xff]   ;;  %v632_v2 = vld [vmem:[%s932_s1 + $0x8] sm:$0xff]   ;;  %20 = vst.msk [vmem:[#allocation2] sm:$0xff] %vm19_vm0, %v666_v3  ;;  %21 = vst.msk [vmem:[#allocation2 + $0x8] sm:$0xff] %vm19_vm0, %v666_v3  ;;  %vm241_vm2 = vcmask 1040384   ;;  %vm242_vm3 = vcmask 1041408  }
   0x2   :  { %249 = vmatpush1.bf16.msra.mxu0 %v631_v1  ;;  %618 = vmatpush1.bf16.msra.mxu1 %v631_v1  ;;  %22 = vst.msk [vmem:[#allocation2 + $0x10] sm:$0xff] %vm19_vm0, %v666_v3  ;;  %23 = vst.msk [vmem:[#allocation2 + $0x18] sm:$0xff] %vm19_vm0, %v666_v3  ;;  %v633_v4 = vld [vmem:[%s932_s1 + $0x10] sm:$0xff]   ;;  %v634_v5 = vld [vmem:[%s932_s1 + $0x18] sm:$0xff]   ;;  %v667_v12 = vmov 65535   ;;  %vm519_vm4 = vcmask 519168  }
   0x3   :  { %250 = vmatprep.subr.bf16.mxu0 %v665_v0  ;;  %609 = vmatprep.subr.bf16.mxu1 %v665_v0  ;;  %24 = vst.msk [vmem:[#allocation2 + $0x20] sm:$0xff] %vm19_vm0, %v666_v3  ;;  %25 = vst.msk [vmem:[#allocation2 + $0x28] sm:$0xff] %vm19_vm0, %v666_v3  ;;  %v643_v6 = vld [vmem:[%s933_s0 + $0x4] ss:$8 sps:$4 sm:$0xff]   ;;  %v637_v10 = vld [vmem:[%s932_s1 + $0x30] sm:$0xff]   ;;  %v243_v13 = vsel %vm241_vm2, 4294967295, %v667_v12 }
   0x4   :  { %26 = vst.msk [vmem:[#allocation2 + $0x30] sm:$0xff] %vm19_vm0, %v666_v3  ;;  %27 = vst.msk [vmem:[#allocation2 + $0x38] sm:$0xff] %vm19_vm0, %v666_v3  ;;  %566 = vmatprep.mubr.msk.bf16.mxu0 %vm216_vm1, %v643_v6  ;;  %v646_v7 = vld [vmem:[%s933_s0 + $0x44] ss:$8 sps:$4 sm:$0xff]   ;;  %v638_v11 = vld [vmem:[%s932_s1 + $0x38] sm:$0xff]   ;;  %v244_v16 = vsel %vm242_vm3, %v243_v13, 0 }
   0x5   :  { %28 = vst.msk [vmem:[#allocation2 + $0x40] sm:$0xff] %vm19_vm0, %v666_v3  ;;  %29 = vst.msk [vmem:[#allocation2 + $0x48] sm:$0xff] %vm19_vm0, %v666_v3  ;;  %v635_v8 = vld [vmem:[%s932_s1 + $0x20] sm:$0xff]   ;;  %570 = vmatprep.mubr.msk.bf16.mxu1 %vm216_vm1, %v646_v7  ;;  %v636_v9 = vld [vmem:[%s932_s1 + $0x28] sm:$0xff]  }
   0x6   :  { %30 = vst.msk [vmem:[#allocation2 + $0x50] sm:$0xff] %vm19_vm0, %v666_v3  ;;  %31 = vst.msk [vmem:[#allocation2 + $0x58] sm:$0xff] %vm19_vm0, %v666_v3  ;;  %251 = vmatpush1.bf16.msra.mxu0 %v632_v2  ;;  %619 = vmatpush1.bf16.msra.mxu1 %v632_v2  ;;  %v639_v14 = vld [vmem:[%s932_s1 + $0x40] sm:$0xff]   ;;  %v640_v15 = vld [vmem:[%s932_s1 + $0x48] ss:$0 sps:$4 sm:$0x33]  }
   0x7   :  { %32 = vst.msk [vmem:[#allocation2 + $0x60] sm:$0xff] %vm19_vm0, %v666_v3  ;;  %33 = vst.msk [vmem:[#allocation2 + $0x68] sm:$0xff] %vm19_vm0, %v666_v3  ;;  %252 = vmatprep.subr.bf16.mxu0 %v665_v0  ;;  %610 = vmatprep.subr.bf16.mxu1 %v665_v0  ;;  %v246_v17 = vand.u32 %v640_v15, %v244_v16  ;;  %v641_v18 = vld [vmem:[%s933_s0] ss:$8 sps:$4 sm:$0xff]   ;;  %v647_v20 = vld [vmem:[%s933_s0 + $0x14] ss:$8 sps:$4 sm:$0xff]  }
   0x8   :  { %34 = vst.msk [vmem:[#allocation2 + $0x70] sm:$0xff] %vm19_vm0, %v666_v3  ;;  %35 = vst.msk [vmem:[#allocation2 + $0x78] sm:$0xff] %vm19_vm0, %v666_v3  ;;  %v644_v19 = vld [vmem:[%s933_s0 + $0x40] ss:$8 sps:$4 sm:$0xff]   ;;  %v649_v21 = vld [vmem:[%s933_s0 + $0x54] ss:$8 sps:$4 sm:$0xff]  }
   0x9   :  { %v651_v22 = vld [vmem:[%s933_s0 + $0x10] ss:$8 sps:$4 sm:$0xff]   ;;  %v653_v24 = vld [vmem:[%s933_s0 + $0x24] ss:$8 sps:$4 sm:$0xff]   ;;  %v657_v26 = vld [vmem:[%s933_s0 + $0x20] ss:$8 sps:$4 sm:$0xff]  }
   0xa   :  { %253 = vmatpush1.bf16.msra.mxu0 %v633_v4  ;;  %620 = vmatpush1.bf16.msra.mxu1 %v633_v4  ;;  %v652_v23 = vld [vmem:[%s933_s0 + $0x50] ss:$8 sps:$4 sm:$0xff]   ;;  %v655_v25 = vld [vmem:[%s933_s0 + $0x64] ss:$8 sps:$4 sm:$0xff]   ;;  %v658_v27 = vld [vmem:[%s933_s0 + $0x60] ss:$8 sps:$4 sm:$0xff]  }
   0xb   :  { %254 = vmatprep.subr.bf16.mxu0 %v665_v0  ;;  %611 = vmatprep.subr.bf16.mxu1 %v665_v0  ;;  %v659_v28 = vld [vmem:[%s933_s0 + $0x34] ss:$8 sps:$4 sm:$0xff]   ;;  %v663_v30 = vld [vmem:[%s933_s0 + $0x30] ss:$8 sps:$4 sm:$0xff]   ;;  %v36_v32 = vld [vmem:[#allocation2] sm:$0xff] }
   0xc   :  { %v661_v29 = vld [vmem:[%s933_s0 + $0x74] ss:$8 sps:$4 sm:$0xff]   ;;  %v664_v31 = vld [vmem:[%s933_s0 + $0x70] ss:$8 sps:$4 sm:$0xff]   ;;  %v44_v33 = vld [vmem:[#allocation2 + $0x40] sm:$0xff] }
   0xd   :  { %v37_v36 = vld [vmem:[#allocation2 + $0x8] sm:$0xff]  ;;  %v38_v48 = vld [vmem:[#allocation2 + $0x10] sm:$0xff]  ;;  %v817_v50 = vld [vmem:[%s934_s2] ss:$0 sm:$0xff] }
   0xe   :  { %255 = vmatpush1.bf16.msra.mxu0 %v634_v5  ;;  %621 = vmatpush1.bf16.msra.mxu1 %v634_v5  ;;  %v45_v37 = vld [vmem:[#allocation2 + $0x48] sm:$0xff]  ;;  %v46_v49 = vld [vmem:[#allocation2 + $0x50] sm:$0xff]  ;;  %v39_v53 = vld [vmem:[#allocation2 + $0x18] sm:$0xff] }
   0xf   :  { %256 = vmatprep.subr.bf16.mxu0 %v665_v0  ;;  %612 = vmatprep.subr.bf16.mxu1 %v665_v0  ;;  %v47_v54 = vld [vmem:[#allocation2 + $0x58] sm:$0xff]  ;;  %v822_v60 = vld [vmem:[%s934_s2 + $0x1] ss:$0 sm:$0xff] }
  0x10   :  { %v40_v16 = vld [vmem:[#allocation2 + $0x20] sm:$0xff] }
  0x12   :  { %257 = vmatpush1.bf16.msra.mxu0 %v635_v8  ;;  %622 = vmatpush1.bf16.msra.mxu1 %v635_v8 }
  0x13   :  { %258 = vmatprep.subr.bf16.mxu0 %v665_v0  ;;  %613 = vmatprep.subr.bf16.mxu1 %v665_v0 }
  0x16   :  { %259 = vmatpush1.bf16.msra.mxu0 %v636_v9  ;;  %623 = vmatpush1.bf16.msra.mxu1 %v636_v9 }
  0x17   :  { %260 = vmatprep.subr.bf16.mxu0 %v665_v0  ;;  %614 = vmatprep.subr.bf16.mxu1 %v665_v0 }
  0x1a   :  { %261 = vmatpush1.bf16.msra.mxu0 %v637_v10  ;;  %624 = vmatpush1.bf16.msra.mxu1 %v637_v10 }
  0x1b   :  { %262 = vmatprep.subr.bf16.mxu0 %v665_v0  ;;  %615 = vmatprep.subr.bf16.mxu1 %v665_v0 }
  0x1e   :  { %263 = vmatpush1.bf16.msra.mxu0 %v638_v11  ;;  %625 = vmatpush1.bf16.msra.mxu1 %v638_v11 }
  0x1f   :  { %264 = vmatprep.subr.bf16.mxu0 %v665_v0  ;;  %616 = vmatprep.subr.bf16.mxu1 %v665_v0 }
  0x22   :  { %265 = vmatpush1.bf16.msra.mxu0 %v639_v14  ;;  %626 = vmatpush1.bf16.msra.mxu1 %v639_v14 }
  0x23   :  { %266 = vmatprep.subr.bf16.mxu0 %v665_v0  ;;  %617 = vmatprep.subr.bf16.mxu1 %v665_v0 }
  0x26   :  { %267 = vmatpush1.bf16.msra.mxu0 %v246_v17  ;;  %627 = vmatpush1.bf16.msra.mxu1 %v246_v17  ;;  %v48_v17 = vld [vmem:[#allocation2 + $0x60] sm:$0xff] }
  0x29   :  { %281 = vmatmul.mubr.bf16.vlgmr.msra.gmra.mrb[0].mxu0 %v641_v18  ;;  %313 = vmatmul.mubr.bf16.vlgmr.msra.gmra.mrb[0].mxu1 %v644_v19 }
  0x2a   :  { %567 = vmatprep.mubr.msk.bf16.mxu0 %vm216_vm1, %v647_v20  ;;  %571 = vmatprep.mubr.msk.bf16.mxu1 %vm216_vm1, %v649_v21 }
  0x31   :  { %289 = vmatmul.mubr.bf16.gmra.mrb[4].mxu0 %v651_v22  ;;  %321 = vmatmul.mubr.bf16.gmra.mrb[4].mxu1 %v652_v23 }
  0x32   :  { %568 = vmatprep.mubr.msk.bf16.mxu0 %vm216_vm1, %v653_v24  ;;  %572 = vmatprep.mubr.msk.bf16.mxu1 %vm216_vm1, %v655_v25 }
  0x39   :  { %297 = vmatmul.mubr.bf16.gmra.mrb[8].mxu0 %v657_v26  ;;  %329 = vmatmul.mubr.bf16.gmra.mrb[8].mxu1 %v658_v27  ;;  %v41_v26 = vld [vmem:[#allocation2 + $0x28] sm:$0xff] }
  0x3a   :  { %569 = vmatprep.mubr.msk.bf16.mxu0 %vm216_vm1, %v659_v28  ;;  %573 = vmatprep.mubr.msk.bf16.mxu1 %vm216_vm1, %v661_v29  ;;  %v49_v27 = vld [vmem:[#allocation2 + $0x68] sm:$0xff] }
  0x41   :  { %305 = vmatmul.mubr.bf16.gmra.mrb[12].mxu0 %v663_v30  ;;  %337 = vmatmul.mubr.bf16.gmra.mrb[12].mxu1 %v664_v31 }
  0xfc   :  { %v282_v34 = vpop.f32.mrb[0].mxu0  ;;  %v314_v35 = vpop.f32.mrb[0].mxu1 }
  0xfd   :  { %v345_v38 = vadd.f32 %v282_v34, %v36_v32  ;;  %v353_v39 = vadd.f32 %v314_v35, %v44_v33  ;;  %v284_v40 = vpop.f32.mrb[1].mxu0  ;;  %v316_v41 = vpop.f32.mrb[1].mxu1 }
  0xfe   :  { %v285_v42 = vpop.f32.mrb[2].mxu0  ;;  %v317_v43 = vpop.f32.mrb[2].mxu1 }
  0xff   :  { %362 = vst.msk [vmem:[#allocation2] sm:$0xff] %vm19_vm0, %v345_v38  ;;  %370 = vst.msk [vmem:[#allocation2 + $0x40] sm:$0xff] %vm19_vm0, %v353_v39  ;;  %v346_v44 = vadd.f32 %v285_v42, %v37_v36  ;;  %v354_v45 = vadd.f32 %v317_v43, %v45_v37  ;;  %v287_v46 = vpop.f32.mrb[3].mxu0  ;;  %v319_v47 = vpop.f32.mrb[3].mxu1 }
 0x101   :  { %363 = vst.msk [vmem:[#allocation2 + $0x8] sm:$0xff] %vm19_vm0, %v346_v44  ;;  %371 = vst.msk [vmem:[#allocation2 + $0x48] sm:$0xff] %vm19_vm0, %v354_v45 }
 0x104   :  { %v290_v51 = vpop.f32.mrb[4].mxu0  ;;  %v322_v52 = vpop.f32.mrb[4].mxu1 }
 0x105   :  { %v347_v55 = vadd.f32 %v290_v51, %v38_v48  ;;  %v355_v56 = vadd.f32 %v322_v52, %v46_v49  ;;  %v292_v57 = vpop.f32.mrb[5].mxu0  ;;  %v324_v58 = vpop.f32.mrb[5].mxu1 }
 0x106   :  { %v381_v59 = vld [vmem:[#allocation2] sm:$0xff]  ;;  %v293_v62 = vpop.f32.mrb[6].mxu0  ;;  %v325_v63 = vpop.f32.mrb[6].mxu1  ;;  %v43_v57 = vld [vmem:[#allocation2 + $0x38] sm:$0xff] }
 0x107   :  { %v389_v61 = vld [vmem:[#allocation2 + $0x40] sm:$0xff]  ;;  %v402_v0 = vmul.f32 %v817_v50, %v381_v59  ;;  %364 = vst.msk [vmem:[#allocation2 + $0x10] sm:$0xff] %vm19_vm0, %v347_v55  ;;  %372 = vst.msk [vmem:[#allocation2 + $0x50] sm:$0xff] %vm19_vm0, %v355_v56  ;;  %v348_v2 = vadd.f32 %v293_v62, %v39_v53  ;;  %v356_v3 = vadd.f32 %v325_v63, %v47_v54  ;;  %v295_v4 = vpop.f32.mrb[7].mxu0  ;;  %v327_v5 = vpop.f32.mrb[7].mxu1  ;;  %v42_v53 = vld [vmem:[#allocation2 + $0x30] sm:$0xff] }
 0x108   :  { %v410_v1 = vmul.f32 %v817_v50, %v389_v61  ;;  %v382_v6 = vld [vmem:[#allocation2 + $0x8] sm:$0xff]  ;;  %v50_v54 = vld [vmem:[#allocation2 + $0x70] sm:$0xff]  ;;  %v51_v58 = vld [vmem:[#allocation2 + $0x78] sm:$0xff] }
 0x109   :  { %v390_v7 = vld [vmem:[#allocation2 + $0x48] sm:$0xff]  ;;  %v423_v8 = vadd.f32 %v822_v60, %v402_v0  ;;  %v403_v10 = vmul.f32 %v817_v50, %v382_v6  ;;  %365 = vst.msk [vmem:[#allocation2 + $0x18] sm:$0xff] %vm19_vm0, %v348_v2  ;;  %373 = vst.msk [vmem:[#allocation2 + $0x58] sm:$0xff] %vm19_vm0, %v356_v3 }
 0x10a   :  { %v431_v9 = vadd.f32 %v822_v60, %v410_v1  ;;  %v411_v11 = vmul.f32 %v817_v50, %v390_v7 }
 0x10b   :  { %v439_v12 = vmax.f32 %v423_v8, 0.0  ;;  %v424_v14 = vadd.f32 %v822_v60, %v403_v10 }
 0x10c   :  { %v447_v13 = vmax.f32 %v431_v9, 0.0  ;;  %v432_v15 = vadd.f32 %v822_v60, %v411_v11  ;;  %v298_v18 = vpop.f32.mrb[8].mxu0  ;;  %v330_v19 = vpop.f32.mrb[8].mxu1 }
 0x10d   :  { %v592_v20 = vpack.c.bf16 %v439_v12, %v439_v12  ;;  %v440_v22 = vmax.f32 %v424_v14, 0.0  ;;  %v300_v24 = vpop.f32.mrb[9].mxu0  ;;  %v332_v25 = vpop.f32.mrb[9].mxu1  ;;  %v349_v30 = vadd.f32 %v298_v18, %v40_v16  ;;  %v357_v31 = vadd.f32 %v330_v19, %v48_v17 }
 0x10e   :  { %v600_v21 = vpack.c.bf16 %v447_v13, %v447_v13  ;;  %v448_v23 = vmax.f32 %v432_v15, 0.0  ;;  %v383_v28 = vld [vmem:[#allocation2 + $0x10] sm:$0xff]  ;;  %v301_v32 = vpop.f32.mrb[10].mxu0  ;;  %v333_v33 = vpop.f32.mrb[10].mxu1 }
 0x10f   :  { %v391_v29 = vld [vmem:[#allocation2 + $0x50] sm:$0xff]  ;;  %520 = vst.msk [vmem:[%s935_s3] sm:$0xf] %vm519_vm4, %v592_v20  ;;  %v593_v34 = vpack.c.bf16 %v440_v22, %v440_v22  ;;  %v404_v36 = vmul.f32 %v817_v50, %v383_v28  ;;  %v303_v38 = vpop.f32.mrb[11].mxu0  ;;  %v335_v39 = vpop.f32.mrb[11].mxu1  ;;  %v350_v42 = vadd.f32 %v301_v32, %v41_v26  ;;  %v358_v43 = vadd.f32 %v333_v33, %v49_v27 }
 0x110   :  { %528 = vst.msk [vmem:[%s935_s3 + $0x20] sm:$0xf] %vm519_vm4, %v600_v21  ;;  %v601_v35 = vpack.c.bf16 %v448_v23, %v448_v23  ;;  %v412_v37 = vmul.f32 %v817_v50, %v391_v29  ;;  %v384_v40 = vld [vmem:[#allocation2 + $0x18] sm:$0xff] }
 0x111   :  { %v392_v41 = vld [vmem:[#allocation2 + $0x58] sm:$0xff]  ;;  %366 = vst.msk [vmem:[#allocation2 + $0x20] sm:$0xff] %vm19_vm0, %v349_v30  ;;  %374 = vst.msk [vmem:[#allocation2 + $0x60] sm:$0xff] %vm19_vm0, %v357_v31  ;;  %v425_v44 = vadd.f32 %v822_v60, %v404_v36  ;;  %v405_v46 = vmul.f32 %v817_v50, %v384_v40 }
 0x112   :  { %521 = vst.msk [vmem:[%s935_s3 + $0x4] sm:$0xf] %vm519_vm4, %v593_v34  ;;  %529 = vst.msk [vmem:[%s935_s3 + $0x24] sm:$0xf] %vm519_vm4, %v601_v35  ;;  %v433_v45 = vadd.f32 %v822_v60, %v412_v37  ;;  %v413_v47 = vmul.f32 %v817_v50, %v392_v41 }
 0x113   :  { %367 = vst.msk [vmem:[#allocation2 + $0x28] sm:$0xff] %vm19_vm0, %v350_v42  ;;  %375 = vst.msk [vmem:[#allocation2 + $0x68] sm:$0xff] %vm19_vm0, %v358_v43  ;;  %v441_v48 = vmax.f32 %v425_v44, 0.0  ;;  %v426_v51 = vadd.f32 %v822_v60, %v405_v46 }
 0x114   :  { %v449_v49 = vmax.f32 %v433_v45, 0.0  ;;  %v434_v52 = vadd.f32 %v822_v60, %v413_v47  ;;  %v306_v55 = vpop.f32.mrb[12].mxu0  ;;  %v338_v56 = vpop.f32.mrb[12].mxu1 }
 0x115   :  { %v594_v59 = vpack.c.bf16 %v441_v48, %v441_v48  ;;  %v442_v62 = vmax.f32 %v426_v51, 0.0  ;;  %v308_v0 = vpop.f32.mrb[13].mxu0  ;;  %v340_v1 = vpop.f32.mrb[13].mxu1  ;;  %v351_v2 = vadd.f32 %v306_v55, %v42_v53  ;;  %v359_v3 = vadd.f32 %v338_v56, %v50_v54 }
 0x116   :  { %v602_v61 = vpack.c.bf16 %v449_v49, %v449_v49  ;;  %v450_v63 = vmax.f32 %v434_v52, 0.0  ;;  %v309_v4 = vpop.f32.mrb[14].mxu0  ;;  %v341_v5 = vpop.f32.mrb[14].mxu1 }
 0x117   :  { %522 = vst.msk [vmem:[%s935_s3 + $0x8] sm:$0xf] %vm519_vm4, %v594_v59  ;;  %v595_v6 = vpack.c.bf16 %v442_v62, %v442_v62  ;;  %v352_v10 = vadd.f32 %v309_v4, %v43_v57  ;;  %v360_v11 = vadd.f32 %v341_v5, %v51_v58  ;;  %v311_v12 = vpop.f32.mrb[15].mxu0  ;;  %v343_v13 = vpop.f32.mrb[15].mxu1 }
 0x118   :  { %530 = vst.msk [vmem:[%s935_s3 + $0x28] sm:$0xf] %vm519_vm4, %v602_v61  ;;  %v603_v7 = vpack.c.bf16 %v450_v63, %v450_v63  ;;  %v385_v8 = vld [vmem:[#allocation2 + $0x20] sm:$0xff] }
 0x119   :  { %v393_v9 = vld [vmem:[#allocation2 + $0x60] sm:$0xff]  ;;  %v406_v14 = vmul.f32 %v817_v50, %v385_v8  ;;  %368 = vst.msk [vmem:[#allocation2 + $0x30] sm:$0xff] %vm19_vm0, %v351_v2  ;;  %376 = vst.msk [vmem:[#allocation2 + $0x70] sm:$0xff] %vm19_vm0, %v359_v3 }
 0x11a   :  { %v414_v15 = vmul.f32 %v817_v50, %v393_v9  ;;  %523 = vst.msk [vmem:[%s935_s3 + $0xc] sm:$0xf] %vm519_vm4, %v595_v6  ;;  %531 = vst.msk [vmem:[%s935_s3 + $0x2c] sm:$0xf] %vm519_vm4, %v603_v7  ;;  %v386_v16 = vld [vmem:[#allocation2 + $0x28] sm:$0xff] }
 0x11b   :  { %v394_v17 = vld [vmem:[#allocation2 + $0x68] sm:$0xff]  ;;  %369 = vst.msk [vmem:[#allocation2 + $0x38] sm:$0xff] %vm19_vm0, %v352_v10  ;;  %377 = vst.msk [vmem:[#allocation2 + $0x78] sm:$0xff] %vm19_vm0, %v360_v11  ;;  %v427_v18 = vadd.f32 %v822_v60, %v406_v14  ;;  %v407_v20 = vmul.f32 %v817_v50, %v386_v16 }
 0x11c   :  { %v435_v19 = vadd.f32 %v822_v60, %v414_v15  ;;  %v415_v21 = vmul.f32 %v817_v50, %v394_v17 }
 0x11d   :  { %v443_v22 = vmax.f32 %v427_v18, 0.0  ;;  %v428_v24 = vadd.f32 %v822_v60, %v407_v20 }
 0x11e   :  { %v451_v23 = vmax.f32 %v435_v19, 0.0  ;;  %v436_v25 = vadd.f32 %v822_v60, %v415_v21 }
 0x11f   :  { %v596_v26 = vpack.c.bf16 %v443_v22, %v443_v22  ;;  %v444_v28 = vmax.f32 %v428_v24, 0.0 }
 0x120   :  { %v604_v27 = vpack.c.bf16 %v451_v23, %v451_v23  ;;  %v452_v29 = vmax.f32 %v436_v25, 0.0  ;;  %v387_v30 = vld [vmem:[#allocation2 + $0x30] sm:$0xff] }
 0x121   :  { %v395_v31 = vld [vmem:[#allocation2 + $0x70] sm:$0xff]  ;;  %524 = vst.msk [vmem:[%s935_s3 + $0x10] sm:$0xf] %vm519_vm4, %v596_v26  ;;  %v597_v32 = vpack.c.bf16 %v444_v28, %v444_v28  ;;  %v408_v34 = vmul.f32 %v817_v50, %v387_v30 }
 0x122   :  { %532 = vst.msk [vmem:[%s935_s3 + $0x30] sm:$0xf] %vm519_vm4, %v604_v27  ;;  %v605_v33 = vpack.c.bf16 %v452_v29, %v452_v29  ;;  %v416_v35 = vmul.f32 %v817_v50, %v395_v31  ;;  %v388_v36 = vld [vmem:[#allocation2 + $0x38] sm:$0xff] }
 0x123   :  { %v396_v37 = vld [vmem:[#allocation2 + $0x78] sm:$0xff]  ;;  %v409_v38 = vmul.f32 %v817_v50, %v388_v36  ;;  %525 = vst.msk [vmem:[%s935_s3 + $0x14] sm:$0xf] %vm519_vm4, %v597_v32  ;;  %v429_v40 = vadd.f32 %v822_v60, %v408_v34 }
 0x124   :  { %v417_v39 = vmul.f32 %v817_v50, %v396_v37  ;;  %533 = vst.msk [vmem:[%s935_s3 + $0x34] sm:$0xf] %vm519_vm4, %v605_v33  ;;  %v437_v41 = vadd.f32 %v822_v60, %v416_v35 }
 0x125   :  { %v430_v42 = vadd.f32 %v822_v60, %v409_v38  ;;  %v445_v44 = vmax.f32 %v429_v40, 0.0 }
 0x126   :  { %v438_v43 = vadd.f32 %v822_v60, %v417_v39  ;;  %v453_v50 = vmax.f32 %v437_v41, 0.0 }
 0x127   :  { %v446_v45 = vmax.f32 %v430_v42, 0.0  ;;  %v598_v47 = vpack.c.bf16 %v445_v44, %v445_v44 }
 0x128   :  { %v454_v46 = vmax.f32 %v438_v43, 0.0  ;;  %v606_v48 = vpack.c.bf16 %v453_v50, %v453_v50 }
 0x129   :  { %v599_v49 = vpack.c.bf16 %v446_v45, %v446_v45  ;;  %526 = vst.msk [vmem:[%s935_s3 + $0x18] sm:$0xf] %vm519_vm4, %v598_v47 }
 0x12a   :  { %v607_v51 = vpack.c.bf16 %v454_v46, %v454_v46  ;;  %534 = vst.msk [vmem:[%s935_s3 + $0x38] sm:$0xf] %vm519_vm4, %v606_v48 }
 0x12b   :  { %527 = vst.msk [vmem:[%s935_s3 + $0x1c] sm:$0xf] %vm519_vm4, %v599_v49 }
 0x12c   :  { %535 = vst.msk [vmem:[%s935_s3 + $0x3c] sm:$0xf] %vm519_vm4, %v607_v51 }

</bundles_post_ra>
